<compile_context>
chip_gen: v7x
topology: tpu7x:2x2x1
jax: 0.10.0
libtpu: 0.0.40
codegen_flags: <defaults>
</compile_context>

<pallas_src>
import functools
import math

import jax
import jax.numpy as jnp
from jax import lax
from jax.experimental import pallas as pl
from jax.experimental.pallas import tpu as pltpu


def _clip_loss_kernel(scale_ref, img_ref, txt_ref, out_ref,
                      m_row, s_row, col_m, col_s, acc_row, acc_diag,
                      *, batch):
    i = pl.program_id(0)
    j = pl.program_id(1)
    nbi = pl.num_programs(0)
    nbj = pl.num_programs(1)

    # logit_scale is the raw log-scale parameter (log(1/0.07)); exp() here.
    scale = jnp.exp(scale_ref[0])

    img = img_ref[...].astype(jnp.float32)
    txt = txt_ref[...].astype(jnp.float32)
    # L2-normalize along the feature axis; fold logit_scale into the image
    # tile so scaling stays O(B*C) and fuses with the rsqrt pass.
    img = img * (scale * lax.rsqrt(jnp.sum(img * img, axis=-1, keepdims=True)))
    txt = txt * lax.rsqrt(jnp.sum(txt * txt, axis=-1, keepdims=True))

    # ---- accumulator init -------------------------------------------------
    @pl.when(jnp.logical_and(i == 0, j == 0))
    def _():
        col_m[...] = jnp.full_like(col_m, -jnp.inf)
        col_s[...] = jnp.zeros_like(col_s)
        acc_row[...] = jnp.zeros_like(acc_row)
        acc_diag[...] = jnp.zeros_like(acc_diag)

    @pl.when(j == 0)
    def _():
        m_row[...] = jnp.full_like(m_row, -jnp.inf)
        s_row[...] = jnp.zeros_like(s_row)

    # ---- diagonal (target) logits: direct row-wise dot, no (B,B) masks ----
    # Square tiles => diagonal entries only appear when the row tile and the
    # column tile coincide.
    @pl.when(i == j)
    def _():
        acc_diag[...] = acc_diag[...] + jnp.sum(img * txt)

    # ---- similarity tile on the MXU ---------------------------------------
    # bf16 operands (fast path on v6e/v7x MXU), f32 accumulation, contracting
    # the feature dim of both operands (no materialized transpose of txt).
    logits = lax.dot_general(
        img.astype(jnp.bfloat16), txt.astype(jnp.bfloat16),
        dimension_numbers=(((1,), (1,)), ((), ())),
        preferred_element_type=jnp.float32)               # (block, block)

    # ---- one shared shift, ONE exp pass feeding both LSE directions -------
    t_max = jnp.max(logits)
    e = jnp.exp(logits - t_max)

    # Online row-LSE (reduction over the inner j axis).
    new_m_row = jnp.maximum(m_row[...], t_max)
    s_row[...] = (s_row[...] * jnp.exp(m_row[...] - new_m_row)
                  + jnp.sum(e, axis=-1, keepdims=True) * jnp.exp(t_max - new_m_row))
    m_row[...] = new_m_row

    # Online column-LSE (reduction over the outer i axis); stats persist in a
    # VMEM scratch indexed by the column-tile id.
    old_m_col = col_m[j]
    new_m_col = jnp.maximum(old_m_col, t_max)
    col_s[j] = (col_s[j] * jnp.exp(old_m_col - new_m_col)
                + jnp.sum(e, axis=0, keepdims=True) * jnp.exp(t_max - new_m_col))
    col_m[j] = new_m_col

    # ---- finalize ----------------------------------------------------------
    @pl.when(j == nbj - 1)
    def _():
        acc_row[...] = acc_row[...] + jnp.sum(m_row[...] + jnp.log(s_row[...]))

    @pl.when(jnp.logical_and(i == nbi - 1, j == nbj - 1))
    def _():
        lse_col_sum = jnp.sum(col_m[...] + jnp.log(col_s[...]))
        inv_b = jnp.float32(1.0 / batch)
        loss = (0.5 * (acc_row[...] + lse_col_sum) - acc_diag[...]) * inv_b
        out_ref[...] = loss


def _pick_block(batch):
    # Largest lane-friendly tile that divides the batch; small batches run as
    # a single tile (block shape equal to the full array dims is always legal).
    for blk in (512, 256, 128):
        if batch % blk == 0:
            return blk
    # TODO(synk): add a pad+mask path for large batches not divisible by 128.
    return batch


def clip_loss_1d(image_features, text_features, logit_scale_log, *, block=None):
    """image_features, text_features: (B, C); logit_scale_log: scalar log-scale."""
    B, C = image_features.shape
    assert text_features.shape == (B, C)
    if block is None:
        block = _pick_block(B)
    assert B % block == 0, "batch must be divisible by the tile size"
    nb = B // block

    scale_arr = jnp.asarray(logit_scale_log, dtype=jnp.float32).reshape(1)
    kernel = functools.partial(_clip_loss_kernel, batch=B)

    out = pl.pallas_call(
        kernel,
        out_shape=jax.ShapeDtypeStruct((1, 1), jnp.float32),
        grid_spec=pltpu.PrefetchScalarGridSpec(
            num_scalar_prefetch=0,
            grid=(nb, nb),
            in_specs=[
                pl.BlockSpec(memory_space=pltpu.MemorySpace.SMEM),   # logit_scale
                pl.BlockSpec((block, C), lambda i, j: (i, 0)),       # image tile
                pl.BlockSpec((block, C), lambda i, j: (j, 0)),       # text tile
            ],
            out_specs=pl.BlockSpec((1, 1), lambda i, j: (0, 0)),
            scratch_shapes=[
                pltpu.VMEM((block, 1), jnp.float32),      # m_row
                pltpu.VMEM((block, 1), jnp.float32),      # s_row
                pltpu.VMEM((nb, 1, block), jnp.float32),  # col_m (all column tiles)
                pltpu.VMEM((nb, 1, block), jnp.float32),  # col_s
                pltpu.VMEM((1, 1), jnp.float32),          # sum of row LSEs
                pltpu.VMEM((1, 1), jnp.float32),          # sum of diagonal logits
            ],
        ),
        compiler_params=pltpu.CompilerParams(
            # Both axes "arbitrary": column-LSE / scalar accumulators are shared
            # across row tiles, so megacore-parallel row tiles would be wrong.
            dimension_semantics=("arbitrary", "arbitrary"),
            vmem_limit_bytes=48 * 1024 * 1024,
        ),
    )(scale_arr, image_features, text_features)
    return out[0, 0]


def _reference(image_features, text_features, logit_scale_log):
    """Pure-JAX f32 reference of CLIPLoss1D.forward."""
    img = image_features / jnp.linalg.norm(image_features, axis=-1, keepdims=True)
    txt = text_features / jnp.linalg.norm(text_features, axis=-1, keepdims=True)
    logits = jnp.exp(logit_scale_log) * (img @ txt.T)
    diag = jnp.diagonal(logits)
    loss_image = jnp.mean(jax.nn.logsumexp(logits, axis=-1) - diag)
    loss_text = jnp.mean(jax.nn.logsumexp(logits, axis=0) - diag)
    return 0.5 * (loss_image + loss_text)


def _check(val, ref):
    v, r = float(val), float(ref)
    # loose tolerance: bf16 MXU operands vs f32 reference
    assert abs(v - r) < 1e-1 + 2e-2 * abs(r), (v, r)


if __name__ == "__main__":
    # Deterministic parameter init: logit_scale = log(1 / 0.07), as in __init__.
    logit_scale_log = jnp.float32(math.log(1.0 / 0.07))

    # Small deterministic inputs consistent with the (B, C) forward signature.
    B, C = 8, 32
    key = jax.random.PRNGKey(0)
    k_img, k_txt = jax.random.split(key)
    image_features = jax.random.normal(k_img, (B, C), dtype=jnp.float32)
    text_features = jax.random.normal(k_txt, (B, C), dtype=jnp.float32)

    loss = clip_loss_1d(image_features, text_features, logit_scale_log)
    jax.block_until_ready(loss)
    _check(loss, _reference(image_features, text_features, logit_scale_log))

    # Also exercise the multi-tile (grid > 1x1) path with a modest batch.
    B2, C2 = 256, 128
    k1, k2 = jax.random.split(jax.random.PRNGKey(1))
    img2 = jax.random.normal(k1, (B2, C2), dtype=jnp.float32)
    txt2 = jax.random.normal(k2, (B2, C2), dtype=jnp.float32)
    loss2 = clip_loss_1d(img2, txt2, logit_scale_log, block=128)
    jax.block_until_ready(loss2)
    _check(loss2, _reference(img2, txt2, logit_scale_log))

    print("KERNEL_OK")
</pallas_src>

<mosaic_0001>
module attributes {stable_mosaic.version = 11 : i64} {
  func.func @_clip_loss_kernel(%arg0: i32, %arg1: i32, %arg2: memref<1xf32, #tpu.memory_space<smem>>, %arg3: memref<8x32xf32, #tpu.memory_space<vmem>>, %arg4: memref<8x32xf32, #tpu.memory_space<vmem>>, %arg5: memref<1x1xf32, #tpu.memory_space<vmem>>, %arg6: memref<8x1xf32, #tpu.memory_space<vmem>>, %arg7: memref<8x1xf32, #tpu.memory_space<vmem>>, %arg8: memref<1x1x8xf32, #tpu.memory_space<vmem>>, %arg9: memref<1x1x8xf32, #tpu.memory_space<vmem>>, %arg10: memref<1x1xf32, #tpu.memory_space<vmem>>, %arg11: memref<1x1xf32, #tpu.memory_space<vmem>>) attributes {dimension_semantics = [#tpu.dimension_semantics<arbitrary>, #tpu.dimension_semantics<arbitrary>], iteration_bounds = array<i64: 1, 1>, scalar_prefetch = 0 : i64, scratch_operands = 6 : i64, tpu.core_type = #tpu.core_type<tc>, window_params = [{transform_indices = @transform_0, window_bounds = array<i64: 1>}, {transform_indices = @transform_1, window_bounds = array<i64: 8, 32>}, {transform_indices = @transform_2, window_bounds = array<i64: 8, 32>}, {pipeline_mode = #tpu.pipeline_mode<synchronous>, transform_indices = @transform_3, window_bounds = array<i64: 1, 1>}]} {
    %c0 = arith.constant 0 : index
    %0 = memref.load %arg2[%c0] : memref<1xf32, #tpu.memory_space<smem>>
    %1 = math.exp %0 : f32
    %c0_0 = arith.constant 0 : index
    %c0_1 = arith.constant 0 : index
    %2 = vector.load %arg3[%c0_0, %c0_1] : memref<8x32xf32, #tpu.memory_space<vmem>>, vector<8x32xf32>
    %c0_2 = arith.constant 0 : index
    %c0_3 = arith.constant 0 : index
    %3 = vector.load %arg4[%c0_2, %c0_3] : memref<8x32xf32, #tpu.memory_space<vmem>>, vector<8x32xf32>
    %4 = arith.mulf %2, %2 : vector<8x32xf32>
    %cst = arith.constant dense<0.000000e+00> : vector<8xf32>
    %5 = vector.multi_reduction <add>, %4, %cst [1] : vector<8x32xf32> to vector<8xf32>
    %6 = vector.shape_cast %5 : vector<8xf32> to vector<8x1xf32>
    %7 = math.rsqrt %6 : vector<8x1xf32>
    %8 = vector.broadcast %1 : f32 to vector<8x1xf32>
    %9 = arith.mulf %8, %7 : vector<8x1xf32>
    %10 = vector.broadcast %9 : vector<8x1xf32> to vector<8x32xf32>
    %11 = arith.mulf %2, %10 : vector<8x32xf32>
    %12 = arith.mulf %3, %3 : vector<8x32xf32>
    %cst_4 = arith.constant dense<0.000000e+00> : vector<8xf32>
    %13 = vector.multi_reduction <add>, %12, %cst_4 [1] : vector<8x32xf32> to vector<8xf32>
    %14 = vector.shape_cast %13 : vector<8xf32> to vector<8x1xf32>
    %15 = math.rsqrt %14 : vector<8x1xf32>
    %16 = vector.broadcast %15 : vector<8x1xf32> to vector<8x32xf32>
    %17 = arith.mulf %3, %16 : vector<8x32xf32>
    %c0_i32 = arith.constant 0 : i32
    %18 = arith.cmpi eq, %arg0, %c0_i32 : i32
    %c0_i32_5 = arith.constant 0 : i32
    %19 = arith.cmpi eq, %arg1, %c0_i32_5 : i32
    %20 = arith.andi %18, %19 : i1
    %21 = arith.extui %20 : i1 to i32
    %c0_i32_6 = arith.constant 0 : i32
    %22 = arith.cmpi ne, %21, %c0_i32_6 : i32
    scf.if %22 {
      %cst_37 = arith.constant 0xFF800000 : f32
      %90 = vector.broadcast %cst_37 : f32 to vector<1x1x8xf32>
      %c0_38 = arith.constant 0 : index
      %c0_39 = arith.constant 0 : index
      %c0_40 = arith.constant 0 : index
      %91 = vector.load %arg8[%c0_38, %c0_39, %c0_40] : memref<1x1x8xf32, #tpu.memory_space<vmem>>, vector<1x1x8xf32>
      tpu.vector_store %arg8[%c0_38, %c0_39, %c0_40], %90 {strides = array<i32>} : memref<1x1x8xf32, #tpu.memory_space<vmem>>, vector<1x1x8xf32>,
      %cst_41 = arith.constant 0.000000e+00 : f32
      %92 = vector.broadcast %cst_41 : f32 to vector<1x1x8xf32>
      %c0_42 = arith.constant 0 : index
      %c0_43 = arith.constant 0 : index
      %c0_44 = arith.constant 0 : index
      %93 = vector.load %arg9[%c0_42, %c0_43, %c0_44] : memref<1x1x8xf32, #tpu.memory_space<vmem>>, vector<1x1x8xf32>
      tpu.vector_store %arg9[%c0_42, %c0_43, %c0_44], %92 {strides = array<i32>} : memref<1x1x8xf32, #tpu.memory_space<vmem>>, vector<1x1x8xf32>,
      %cst_45 = arith.constant 0.000000e+00 : f32
      %94 = vector.broadcast %cst_45 : f32 to vector<1x1xf32>
      %c0_46 = arith.constant 0 : index
      %c0_47 = arith.constant 0 : index
      %95 = vector.load %arg10[%c0_46, %c0_47] : memref<1x1xf32, #tpu.memory_space<vmem>>, vector<1x1xf32>
      tpu.vector_store %arg10[%c0_46, %c0_47], %94 {strides = array<i32>} : memref<1x1xf32, #tpu.memory_space<vmem>>, vector<1x1xf32>,
      %cst_48 = arith.constant 0.000000e+00 : f32
      %96 = vector.broadcast %cst_48 : f32 to vector<1x1xf32>
      %c0_49 = arith.constant 0 : index
      %c0_50 = arith.constant 0 : index
      %97 = vector.load %arg11[%c0_49, %c0_50] : memref<1x1xf32, #tpu.memory_space<vmem>>, vector<1x1xf32>
      tpu.vector_store %arg11[%c0_49, %c0_50], %96 {strides = array<i32>} : memref<1x1xf32, #tpu.memory_space<vmem>>, vector<1x1xf32>,
    } else {
    }
    %c0_i32_7 = arith.constant 0 : i32
    %23 = arith.cmpi eq, %arg1, %c0_i32_7 : i32
    %24 = arith.extui %23 : i1 to i32
    %c0_i32_8 = arith.constant 0 : i32
    %25 = arith.cmpi ne, %24, %c0_i32_8 : i32
    scf.if %25 {
      %cst_37 = arith.constant 0xFF800000 : f32
      %90 = vector.broadcast %cst_37 : f32 to vector<8x1xf32>
      %c0_38 = arith.constant 0 : index
      %c0_39 = arith.constant 0 : index
      %91 = vector.load %arg6[%c0_38, %c0_39] : memref<8x1xf32, #tpu.memory_space<vmem>>, vector<8x1xf32>
      tpu.vector_store %arg6[%c0_38, %c0_39], %90 {strides = array<i32>} : memref<8x1xf32, #tpu.memory_space<vmem>>, vector<8x1xf32>,
      %cst_40 = arith.constant 0.000000e+00 : f32
      %92 = vector.broadcast %cst_40 : f32 to vector<8x1xf32>
      %c0_41 = arith.constant 0 : index
      %c0_42 = arith.constant 0 : index
      %93 = vector.load %arg7[%c0_41, %c0_42] : memref<8x1xf32, #tpu.memory_space<vmem>>, vector<8x1xf32>
      tpu.vector_store %arg7[%c0_41, %c0_42], %92 {strides = array<i32>} : memref<8x1xf32, #tpu.memory_space<vmem>>, vector<8x1xf32>,
    } else {
    }
    %26 = arith.cmpi eq, %arg0, %arg1 : i32
    %27 = arith.extui %26 : i1 to i32
    %c0_i32_9 = arith.constant 0 : i32
    %28 = arith.cmpi ne, %27, %c0_i32_9 : i32
    scf.if %28 {
      %c0_37 = arith.constant 0 : index
      %c0_38 = arith.constant 0 : index
      %90 = vector.load %arg11[%c0_37, %c0_38] : memref<1x1xf32, #tpu.memory_space<vmem>>, vector<1x1xf32>
      %91 = arith.mulf %11, %17 : vector<8x32xf32>
      %92 = vector.shape_cast %91 : vector<8x32xf32> to vector<1x8x32xf32>
      %cst_39 = arith.constant dense<0.000000e+00> : vector<1xf32>
      %93 = vector.multi_reduction <add>, %92, %cst_39 [1, 2] : vector<1x8x32xf32> to vector<1xf32>
      %94 = vector.shape_cast %93 : vector<1xf32> to vector<1x1x1xf32>
      %95 = vector.extract %94[0, 0, 0] : f32 from vector<1x1x1xf32>
      %96 = vector.broadcast %95 : f32 to vector<1x1xf32>
      %97 = arith.addf %90, %96 : vector<1x1xf32>
      %c0_40 = arith.constant 0 : index
      %c0_41 = arith.constant 0 : index
      %98 = vector.load %arg11[%c0_40, %c0_41] : memref<1x1xf32, #tpu.memory_space<vmem>>, vector<1x1xf32>
      tpu.vector_store %arg11[%c0_40, %c0_41], %97 {strides = array<i32>} : memref<1x1xf32, #tpu.memory_space<vmem>>, vector<1x1xf32>,
    } else {
    }
    %29 = arith.truncf %11 : vector<8x32xf32> to vector<8x32xbf16>
    %30 = arith.truncf %17 : vector<8x32xf32> to vector<8x32xbf16>
    %cst_10 = arith.constant dense<0.000000e+00> : vector<8x8xf32>
    %31 = tpu.matmul %29, %30, %cst_10 {dimension_numbers = #tpu.dot_dimension_numbers<[1], [1], [0], [0], [0, 0, 1, 0], [], []>} : vector<8x32xbf16>, vector<8x32xbf16>, vector<8x8xf32> -> vector<8x8xf32>
    %32 = vector.shape_cast %31 : vector<8x8xf32> to vector<1x8x8xf32>
    %cst_11 = arith.constant dense<0xFF800000> : vector<1xf32>
    %33 = vector.multi_reduction <maximumf>, %32, %cst_11 [1, 2] : vector<1x8x8xf32> to vector<1xf32>
    %34 = vector.shape_cast %33 : vector<1xf32> to vector<1x1x1xf32>
    %35 = vector.extract %34[0, 0, 0] : f32 from vector<1x1x1xf32>
    %36 = vector.broadcast %35 : f32 to vector<8x8xf32>
    %37 = arith.subf %31, %36 : vector<8x8xf32>
    %38 = math.exp %37 : vector<8x8xf32>
    %c0_12 = arith.constant 0 : index
    %c0_13 = arith.constant 0 : index
    %39 = vector.load %arg6[%c0_12, %c0_13] : memref<8x1xf32, #tpu.memory_space<vmem>>, vector<8x1xf32>
    %40 = vector.broadcast %35 : f32 to vector<8x1xf32>
    %41 = arith.maximumf %39, %40 : vector<8x1xf32>
    %c0_14 = arith.constant 0 : index
    %c0_15 = arith.constant 0 : index
    %42 = vector.load %arg7[%c0_14, %c0_15] : memref<8x1xf32, #tpu.memory_space<vmem>>, vector<8x1xf32>
    %c0_16 = arith.constant 0 : index
    %c0_17 = arith.constant 0 : index
    %43 = vector.load %arg6[%c0_16, %c0_17] : memref<8x1xf32, #tpu.memory_space<vmem>>, vector<8x1xf32>
    %44 = arith.subf %43, %41 : vector<8x1xf32>
    %45 = math.exp %44 : vector<8x1xf32>
    %46 = arith.mulf %42, %45 : vector<8x1xf32>
    %cst_18 = arith.constant dense<0.000000e+00> : vector<8xf32>
    %47 = vector.multi_reduction <add>, %38, %cst_18 [1] : vector<8x8xf32> to vector<8xf32>
    %48 = vector.shape_cast %47 : vector<8xf32> to vector<8x1xf32>
    %49 = vector.broadcast %35 : f32 to vector<8x1xf32>
    %50 = arith.subf %49, %41 : vector<8x1xf32>
    %51 = math.exp %50 : vector<8x1xf32>
    %52 = arith.mulf %48, %51 : vector<8x1xf32>
    %53 = arith.addf %46, %52 : vector<8x1xf32>
    %c0_19 = arith.constant 0 : index
    %c0_20 = arith.constant 0 : index
    %54 = vector.load %arg7[%c0_19, %c0_20] : memref<8x1xf32, #tpu.memory_space<vmem>>, vector<8x1xf32>
    tpu.vector_store %arg7[%c0_19, %c0_20], %53 {strides = array<i32>} : memref<8x1xf32, #tpu.memory_space<vmem>>, vector<8x1xf32>,
    %c0_21 = arith.constant 0 : index
    %c0_22 = arith.constant 0 : index
    %55 = vector.load %arg6[%c0_21, %c0_22] : memref<8x1xf32, #tpu.memory_space<vmem>>, vector<8x1xf32>
    tpu.vector_store %arg6[%c0_21, %c0_22], %41 {strides = array<i32>} : memref<8x1xf32, #tpu.memory_space<vmem>>, vector<8x1xf32>,
    %56 = arith.index_cast %arg1 : i32 to index
    %c0_23 = arith.constant 0 : index
    %c0_24 = arith.constant 0 : index
    %57 = vector.load %arg8[%56, %c0_23, %c0_24] : memref<1x1x8xf32, #tpu.memory_space<vmem>>, vector<1x1x8xf32>
    %58 = vector.shape_cast %57 : vector<1x1x8xf32> to vector<1x8xf32>
    %59 = vector.broadcast %35 : f32 to vector<1x8xf32>
    %60 = arith.maximumf %58, %59 : vector<1x8xf32>
    %61 = arith.index_cast %arg1 : i32 to index
    %c0_25 = arith.constant 0 : index
    %c0_26 = arith.constant 0 : index
    %62 = vector.load %arg9[%61, %c0_25, %c0_26] : memref<1x1x8xf32, #tpu.memory_space<vmem>>, vector<1x1x8xf32>
    %63 = vector.shape_cast %62 : vector<1x1x8xf32> to vector<1x8xf32>
    %64 = arith.subf %58, %60 : vector<1x8xf32>
    %65 = math.exp %64 : vector<1x8xf32>
    %66 = arith.mulf %63, %65 : vector<1x8xf32>
    %cst_27 = arith.constant dense<0.000000e+00> : vector<8xf32>
    %67 = vector.multi_reduction <add>, %38, %cst_27 [0] : vector<8x8xf32> to vector<8xf32>
    %68 = vector.shape_cast %67 : vector<8xf32> to vector<1x8xf32>
    %69 = vector.broadcast %35 : f32 to vector<1x8xf32>
    %70 = arith.subf %69, %60 : vector<1x8xf32>
    %71 = math.exp %70 : vector<1x8xf32>
    %72 = arith.mulf %68, %71 : vector<1x8xf32>
    %73 = arith.addf %66, %72 : vector<1x8xf32>
    %74 = arith.index_cast %arg1 : i32 to index
    %c0_28 = arith.constant 0 : index
    %c0_29 = arith.constant 0 : index
    %75 = vector.load %arg9[%74, %c0_28, %c0_29] : memref<1x1x8xf32, #tpu.memory_space<vmem>>, vector<1x1x8xf32>
    %76 = vector.shape_cast %75 : vector<1x1x8xf32> to vector<1x8xf32>
    %77 = vector.shape_cast %73 : vector<1x8xf32> to vector<1x1x8xf32>
    tpu.vector_store %arg9[%74, %c0_28, %c0_29], %77 {strides = array<i32>} : memref<1x1x8xf32, #tpu.memory_space<vmem>>, vector<1x1x8xf32>,
    %78 = arith.index_cast %arg1 : i32 to index
    %c0_30 = arith.constant 0 : index
    %c0_31 = arith.constant 0 : index
    %79 = vector.load %arg8[%78, %c0_30, %c0_31] : memref<1x1x8xf32, #tpu.memory_space<vmem>>, vector<1x1x8xf32>
    %80 = vector.shape_cast %79 : vector<1x1x8xf32> to vector<1x8xf32>
    %81 = vector.shape_cast %60 : vector<1x8xf32> to vector<1x1x8xf32>
    tpu.vector_store %arg8[%78, %c0_30, %c0_31], %81 {strides = array<i32>} : memref<1x1x8xf32, #tpu.memory_space<vmem>>, vector<1x1x8xf32>,
    %c0_i32_32 = arith.constant 0 : i32
    %82 = arith.cmpi eq, %arg1, %c0_i32_32 : i32
    %83 = arith.extui %82 : i1 to i32
    %c0_i32_33 = arith.constant 0 : i32
    %84 = arith.cmpi ne, %83, %c0_i32_33 : i32
    scf.if %84 {
      %c0_37 = arith.constant 0 : index
      %c0_38 = arith.constant 0 : index
      %90 = vector.load %arg10[%c0_37, %c0_38] : memref<1x1xf32, #tpu.memory_space<vmem>>, vector<1x1xf32>
      %c0_39 = arith.constant 0 : index
      %c0_40 = arith.constant 0 : index
      %91 = vector.load %arg6[%c0_39, %c0_40] : memref<8x1xf32, #tpu.memory_space<vmem>>, vector<8x1xf32>
      %c0_41 = arith.constant 0 : index
      %c0_42 = arith.constant 0 : index
      %92 = vector.load %arg7[%c0_41, %c0_42] : memref<8x1xf32, #tpu.memory_space<vmem>>, vector<8x1xf32>
      %93 = math.log %92 : vector<8x1xf32>
      %94 = arith.addf %91, %93 : vector<8x1xf32>
      %95 = vector.shape_cast %94 : vector<8x1xf32> to vector<1x8x1xf32>
      %cst_43 = arith.constant dense<0.000000e+00> : vector<1xf32>
      %96 = vector.multi_reduction <add>, %95, %cst_43 [1, 2] : vector<1x8x1xf32> to vector<1xf32>
      %97 = vector.shape_cast %96 : vector<1xf32> to vector<1x1x1xf32>
      %98 = vector.extract %97[0, 0, 0] : f32 from vector<1x1x1xf32>
      %99 = vector.broadcast %98 : f32 to vector<1x1xf32>
      %100 = arith.addf %90, %99 : vector<1x1xf32>
      %c0_44 = arith.constant 0 : index
      %c0_45 = arith.constant 0 : index
      %101 = vector.load %arg10[%c0_44, %c0_45] : memref<1x1xf32, #tpu.memory_space<vmem>>, vector<1x1xf32>
      tpu.vector_store %arg10[%c0_44, %c0_45], %100 {strides = array<i32>} : memref<1x1xf32, #tpu.memory_space<vmem>>, vector<1x1xf32>,
    } else {
    }
    %c0_i32_34 = arith.constant 0 : i32
    %85 = arith.cmpi eq, %arg0, %c0_i32_34 : i32
    %c0_i32_35 = arith.constant 0 : i32
    %86 = arith.cmpi eq, %arg1, %c0_i32_35 : i32
    %87 = arith.andi %85, %86 : i1
    %88 = arith.extui %87 : i1 to i32
    %c0_i32_36 = arith.constant 0 : i32
    %89 = arith.cmpi ne, %88, %c0_i32_36 : i32
    scf.if %89 {
      %c0_37 = arith.constant 0 : index
      %c0_38 = arith.constant 0 : index
      %c0_39 = arith.constant 0 : index
      %90 = vector.load %arg8[%c0_37, %c0_38, %c0_39] : memref<1x1x8xf32, #tpu.memory_space<vmem>>, vector<1x1x8xf32>
      %c0_40 = arith.constant 0 : index
      %c0_41 = arith.constant 0 : index
      %c0_42 = arith.constant 0 : index
      %91 = vector.load %arg9[%c0_40, %c0_41, %c0_42] : memref<1x1x8xf32, #tpu.memory_space<vmem>>, vector<1x1x8xf32>
      %92 = math.log %91 : vector<1x1x8xf32>
      %93 = arith.addf %90, %92 : vector<1x1x8xf32>
      %94 = vector.shape_cast %93 : vector<1x1x8xf32> to vector<1x1x1x8xf32>
      %cst_43 = arith.constant dense<0.000000e+00> : vector<1xf32>
      %95 = vector.multi_reduction <add>, %94, %cst_43 [1, 2, 3] : vector<1x1x1x8xf32> to vector<1xf32>
      %96 = vector.shape_cast %95 : vector<1xf32> to vector<1x1x1x1xf32>
      %97 = vector.extract %96[0, 0, 0, 0] : f32 from vector<1x1x1x1xf32>
      %c0_44 = arith.constant 0 : index
      %c0_45 = arith.constant 0 : index
      %98 = vector.load %arg10[%c0_44, %c0_45] : memref<1x1xf32, #tpu.memory_space<vmem>>, vector<1x1xf32>
      %99 = vector.broadcast %97 : f32 to vector<1x1xf32>
      %100 = arith.addf %98, %99 : vector<1x1xf32>
      %cst_46 = arith.constant 5.000000e-01 : f32
      %101 = vector.broadcast %cst_46 : f32 to vector<1x1xf32>
      %102 = arith.mulf %101, %100 : vector<1x1xf32>
      %c0_47 = arith.constant 0 : index
      %c0_48 = arith.constant 0 : index
      %103 = vector.load %arg11[%c0_47, %c0_48] : memref<1x1xf32, #tpu.memory_space<vmem>>, vector<1x1xf32>
      %104 = arith.subf %102, %103 : vector<1x1xf32>
      %cst_49 = arith.constant 1.250000e-01 : f32
      %105 = vector.broadcast %cst_49 : f32 to vector<1x1xf32>
      %106 = arith.mulf %104, %105 : vector<1x1xf32>
      %c0_50 = arith.constant 0 : index
      %c0_51 = arith.constant 0 : index
      %107 = vector.load %arg5[%c0_50, %c0_51] : memref<1x1xf32, #tpu.memory_space<vmem>>, vector<1x1xf32>
      tpu.vector_store %arg5[%c0_50, %c0_51], %106 {strides = array<i32>} : memref<1x1xf32, #tpu.memory_space<vmem>>, vector<1x1xf32>,
    } else {
    }
    return
  }
  func.func @transform_0(%arg0: i32, %arg1: i32) -> i32 {
    %c0_i32 = arith.constant 0 : i32
    %c0_i32_0 = arith.constant 0 : i32
    return %c0_i32 : i32
  }
  func.func @transform_1(%arg0: i32, %arg1: i32) -> (i32, i32) {
    %c0_i32 = arith.constant 0 : i32
    %c0_i32_0 = arith.constant 0 : i32
    return %arg0, %c0_i32 : i32, i32
  }
  func.func @transform_2(%arg0: i32, %arg1: i32) -> (i32, i32) {
    %c0_i32 = arith.constant 0 : i32
    %c0_i32_0 = arith.constant 0 : i32
    return %arg1, %c0_i32 : i32, i32
  }
  func.func @transform_3(%arg0: i32, %arg1: i32) -> (i32, i32) {
    %c0_i32 = arith.constant 0 : i32
    %c0_i32_0 = arith.constant 0 : i32
    %c0_i32_1 = arith.constant 0 : i32
    return %c0_i32, %c0_i32_0 : i32, i32
  }
}

</mosaic_0001>

<bundles_post_ra>
// kernel: tpu_custom_call.1
= control target key start
LH: loop header
LB: loop body
LE: loop exit
PB: predicated region body
PF: predicated region fallthrough
CT: control target
= control target key end

     0   :  { %9 = vsyncpa [#allocation10], 0  ;;  %s472_s0 = inlined_call_operand.<no memory space> [shape: f32[1], index: 0, kind: input, shape index: {}]   ;;  %s473_s1 = inlined_call_operand.hbm [shape: f32[8,32], index: 1, kind: input, shape index: {}]   ;;  %s474_s2 = inlined_call_operand.hbm [shape: f32[8,32], index: 2, kind: input, shape index: {}]   ;;  %s475_s3 = inlined_call_operand.hbm [shape: f32[1,1], index: 3, kind: output, shape index: {}]  }
   0x1   :  { %10 = vsyncpa [#allocation13], 0 }
   0x2   :  { %11 = vsyncpa [#allocation11], 0  ;;  %s385_s12 = smov [#allocation9]   ;;  %s386_s14 = smov [#allocation12]  }
   0x3   :  { %s20_s13 = sshll.u32 %s385_s12, 4  ;;  %s30_s15 = sshll.u32 %s386_s14, 4  ;;  %s21_s13 = int_to_ptr.vmem [resolvable:$true] %s20_s13  ;;  %s31_s15 = int_to_ptr.vmem [resolvable:$true] %s30_s15 }
   0x4   :  { %s313_s18 = scalar_lea.hbm %s473_s1, 128 }
   0x5   :  { %p314_p0 = scmp.ne.s32.totalorder %s473_s1, %s313_s18  ;;  %p317_p1 = scmp.lt.u32.totalorder %s313_s18, %s473_s1 }
   0x7   :  { %p319_p2 = pnand %p317_p1, %p314_p0 }
   0x9   :  { %322 = shalt.err (!%p319_p2)
}
   0xa   :  { %s323_s23 = scalar_lea.vmem %s21_s13, 128  ;;  %p328_p4 = scmp.lt.s32.totalorder %s21_s13, %s21_s13 }
   0xb   :  { %p324_p3 = scmp.ne.s32.totalorder %s21_s13, %s323_s23  ;;  %p329_p5 = scmp.lt.s32.totalorder %s323_s23, %s323_s23 }
   0xd   :  { %p330_p6 = por %p329_p5, %p328_p4 }
   0xf   :  { %p331_p7 = pnand %p330_p6, %p324_p3 }
  0x11   :  { %334 = shalt.err (!%p331_p7)
}
  0x12   :  { %23 = dma.hbm_to_vmem [thread:$0]  %s473_s1, 128, %s21_s13, [#allocation10]  }
  0x13   :  { %s335_s28 = scalar_lea.hbm %s474_s2, 128 }
  0x14   :  { %p336_p8 = scmp.ne.s32.totalorder %s474_s2, %s335_s28  ;;  %p339_p9 = scmp.lt.u32.totalorder %s335_s28, %s474_s2 }
  0x16   :  { %p341_p10 = pnand %p339_p9, %p336_p8 }
  0x18   :  { %344 = shalt.err (!%p341_p10)
}
  0x19   :  { %s345_s6 = scalar_lea.vmem %s31_s15, 128  ;;  %p350_p12 = scmp.lt.s32.totalorder %s31_s15, %s31_s15 }
  0x1a   :  { %p346_p11 = scmp.ne.s32.totalorder %s31_s15, %s345_s6  ;;  %p351_p13 = scmp.lt.s32.totalorder %s345_s6, %s345_s6 }
  0x1c   :  { %p352_p0 = por %p351_p13, %p350_p12 }
  0x1e   :  { %p353_p1 = pnand %p352_p0, %p346_p11 }
  0x20   :  { %356 = shalt.err (!%p353_p1)
}
  0x21   :  { %33 = dma.hbm_to_vmem [thread:$0]  %s474_s2, 128, %s31_s15, [#allocation13]  }
  0x22   :  { %379 = dma.done.wait [#allocation10], 128  }
  0x23   :  { %380 = vsyncadd [#allocation10], 4294967168 }
  0x24   :  { %381 = dma.done.wait [#allocation13], 128  }
  0x25   :  { %382 = vsyncadd [#allocation13], 4294967168  ;;  %v42_v0 = vstv %s472_s0  ;;  %v47_v2 = vld [vmem:[#allocation12] sm:$0xff]  ;;  %vm49_vm0 = vcmask 261120   ;;  %v46_v3 = vld [vmem:[#allocation9] sm:$0xff]  ;;  %v387_v9 = vmov 0.0  }
  0x26   :  { %v43_v1 = vmul.f32 1.442695, %v42_v0  ;;  %v57_v4 = vmul.f32 %v47_v2, %v47_v2  ;;  %v48_v5 = vmul.f32 %v46_v3, %v46_v3  ;;  %271 = vmatprep.subr.bf16.mxu0 %v387_v9  ;;  %vm388_vm1 = vmmov 0   ;;  %s390_s13 = smov [#allocation14]  }
  0x27   :  { %273 = vmatprep.mubr.msk.bf16.mxu0 %vm388_vm1, %v387_v9  ;;  %vm72_vm2 = vcmask 0   ;;  %vm149_vm3 = vcmask 64512   ;;  %vm69_vm4 = vcmask 57344   ;;  %vm78_vm5 = vcmask 7168   ;;  %s258_s14 = sshll.u32 %s390_s13, 4  ;;  %s259_s14 = int_to_ptr.vmem [resolvable:$true] %s258_s14 }
  0x28   :  { %293 = vpow2.f32 %v43_v1  ;;  %v58_v6 = vsel %vm49_vm0, %v57_v4, 0.0  ;;  %v50_v7 = vsel %vm49_vm0, %v48_v5, 0.0  ;;  %74 = vst.msk [vmem:[#allocation7] sm:$0x1] %vm72_vm2, %v387_v9  ;;  %73 = vst.msk [vmem:[#allocation6] sm:$0x1] %vm72_vm2, %v387_v9  ;;  %p362_p3 = scmp.lt.s32.totalorder %s259_s14, %s259_s14 }
  0x29   :  { %59 = vadd.xlane.f32.xlu0 %v58_v6  ;;  %v389_v38 = vmov -inf   ;;  %71 = vst.msk [vmem:[#allocation5] sm:$0x1] %vm69_vm4, %v387_v9  ;;  %s357_s15 = scalar_lea.vmem %s259_s14, 16  ;;  %s361_s16 = scalar_lea.vmem %s259_s14, 32 }
  0x2a   :  { %70 = vst.msk [vmem:[#allocation4] sm:$0x1] %vm69_vm4, %v389_v38  ;;  %p358_p2 = scmp.ne.s32.totalorder %s259_s14, %s357_s15  ;;  %p363_p4 = scmp.lt.s32.totalorder %s361_s16, %s357_s15 }
  0x2b   :  { %79 = vst.msk [vmem:[#allocation2] sm:$0xff] %vm78_vm5, %v389_v38  ;;  %80 = vst.msk [vmem:[#allocation3] sm:$0xff] %vm78_vm5, %v387_v9 }
  0x2c   :  { %p364_p5 = por %p363_p4, %p362_p3 }
  0x2d   :  { %51 = vadd.xlane.f32.xlu0 %v50_v7 }
  0x2e   :  { %p365_p6 = pnand %p364_p5, %p358_p2 }
  0x2f   :  { %v85_v30 = vld [vmem:[#allocation7] sm:$0x1] }
  0x31   :  { %v182_v47 = vld [vmem:[#allocation4] sm:$0x1] }
  0x32   :  { %v294_v8 = vpop.eup %293  ;;  %v164_v46 = vld [vmem:[#allocation2] sm:$0xff] }
  0x33   :  { %277 = vpush %v294_v8 }
  0x64   :  { %s278_s0 = spop %277 }
  0x65   :  { %v54_v14 = vstv %s278_s0 }
  0xb6   :  { %v60_v10 = vpop.xlane.xlu0 %59 }
  0xb7   :  { %295 = vrsqrt.f32 %v60_v10 }
  0xba   :  { %v52_v11 = vpop.xlane.xlu0 %51 }
  0xbb   :  { %297 = vrsqrt.f32 %v52_v11 }
  0xc1   :  { %v296_v12 = vpop.eup %295 }
  0xc2   :  { %v62_v13 = vmul.f32 %v296_v12, %v47_v2 }
  0xc4   :  { %v102_v15 = vpack.c.bf16 %v62_v13, %v62_v13 }
  0xc5   :  { %v298_v16 = vpop.eup %297 }
  0xc6   :  { %v55_v17 = vmul.f32 %v298_v16, %v54_v14  ;;  %v107_v18 = vsel %vm49_vm0, %v102_v15, 0 }
  0xc7   :  { %272 = vmatpush3.bf16.xpose.msra.mxu0 %v107_v18  ;;  %v166_v18 = vld [vmem:[#allocation3] sm:$0xff] }
  0xc8   :  { %v56_v19 = vmul.f32 %v55_v17, %v46_v3  ;;  %v184_v3 = vld [vmem:[#allocation5] sm:$0x1] }
  0xca   :  { %v101_v20 = vpack.c.bf16 %v56_v19, %v56_v19  ;;  %v86_v21 = vmul.f32 %v62_v13, %v56_v19 }
  0xcc   :  { %v87_v22 = vsel %vm49_vm0, %v86_v21, 0.0 }
  0xcd   :  { %88 = vadd.xlane.f32.xlu1 %v87_v22 }
  0xce   :  { %274 = vmatmul.mubr.msk.bf16.vlgmr.msra.gmra.mrb[0].mxu0 %vm49_vm0, %v101_v20 }
 0x15a   :  { %v89_v23 = vpop.xlane.xlu1 %88 }
 0x15b   :  { %v90_v24 = vrot.slane %v89_v23, 4 }
 0x15d   :  { %v91_v25 = vadd.f32 %v90_v24, %v89_v23 }
 0x15f   :  { %v92_v26 = vrot.slane %v91_v25, 2 }
 0x161   :  { %v93_v27 = vadd.f32 %v92_v26, %v91_v25 }
 0x163   :  { %v94_v28 = vrot.slane %v93_v27, 1 }
 0x165   :  { %v95_v29 = vadd.f32 %v94_v28, %v93_v27 }
 0x167   :  { %279 = vpush %v95_v29 }
 0x198   :  { %s280_s2 = spop %279 }
 0x199   :  { %v97_v31 = vstv %s280_s2 }
 0x19a   :  { %v98_v32 = vadd.f32 %v97_v31, %v85_v30 }
 0x19c   :  { %100 = vst.msk [vmem:[#allocation7] sm:$0x1] %vm72_vm2, %v98_v32 }
 0x1a1   :  { %v143_v33 = vpop.f32.mrb[0].mxu0 }
 0x1a2   :  { %v275_v34 = vpop.f32.mrb[1].mxu0  ;;  %v150_v35 = vsel %vm149_vm3, %v143_v33, -inf }
 0x1a3   :  { %v146_v36 = vpop.f32.mrb[2].mxu0  ;;  %151 = vmax.xlane.f32.xlu1 %v150_v35 }
 0x1a4   :  { %v276_v37 = vpop.f32.mrb[3].mxu0 }
 0x230   :  { %v152_v39 = vpop.xlane.xlu1 %151 }
 0x231   :  { %v153_v40 = vrot.slane %v152_v39, 4 }
 0x233   :  { %v154_v41 = vmax.f32 %v152_v39, %v153_v40 }
 0x235   :  { %v155_v42 = vrot.slane %v154_v41, 2 }
 0x237   :  { %v156_v43 = vmax.f32 %v154_v41, %v155_v42 }
 0x239   :  { %v157_v44 = vrot.slane %v156_v43, 1 }
 0x23b   :  { %v158_v45 = vmax.f32 %v156_v43, %v157_v44  ;;  %v206_v44 = vld [vmem:[#allocation6] sm:$0x1] }
 0x23d   :  { %281 = vpush %v158_v45 }
 0x26e   :  { %s282_s10 = spop %281 }
 0x26f   :  { %v160_v48 = vstv %s282_s10 }
 0x270   :  { %v161_v49 = vsub.f32 %v143_v33, %v160_v48  ;;  %v165_v50 = vmax.f32 %v164_v46, %v160_v48  ;;  %v183_v51 = vmax.f32 %v182_v47, %v160_v48 }
 0x272   :  { %v162_v52 = vmul.f32 1.442695, %v161_v49  ;;  %v167_v53 = vsub.f32 %v164_v46, %v165_v50  ;;  %v174_v54 = vsub.f32 %v160_v48, %v165_v50  ;;  %181 = vst.msk [vmem:[#allocation2] sm:$0xff] %vm78_vm5, %v165_v50  ;;  %v185_v55 = vsub.f32 %v182_v47, %v183_v51 }
 0x273   :  { %202 = vst.msk [vmem:[#allocation4] sm:$0x1] %vm69_vm4, %v183_v51  ;;  %v195_v56 = vsub.f32 %v160_v48, %v183_v51  ;;  %v247_v51 = vld [vmem:[#allocation7] sm:$0x1] }
 0x274   :  { %299 = vpow2.f32 %v162_v52  ;;  %v186_v57 = vmul.f32 1.442695, %v185_v55  ;;  %v168_v15 = vmul.f32 1.442695, %v167_v53  ;;  %v175_v16 = vmul.f32 1.442695, %v174_v54 }
 0x275   :  { %v196_v58 = vmul.f32 1.442695, %v195_v56 }
 0x276   :  { %301 = vpow2.f32 %v186_v57 }
 0x277   :  { %303 = vpow2.f32 %v196_v58 }
 0x279   :  { %v207_v27 = vld [vmem:[#allocation2] sm:$0xff] }
 0x27a   :  { %v228_v12 = vld [vmem:[#allocation4] sm:$0x1] }
 0x27e   :  { %v300_v59 = vpop.eup %299 }
 0x27f   :  { %v171_v60 = vsel %vm149_vm3, %v300_v59, 0.0 }
 0x280   :  { %172 = vadd.xlane.f32.xlu0 %v171_v60  ;;  %v189_v61 = vrot.slane %v171_v60, 4  ;;  %v302_v2 = vpop.eup %301 }
 0x281   :  { %v304_v5 = vpop.eup %303  ;;  %v188_v6 = vmul.f32 %v302_v2, %v184_v3 }
 0x282   :  { %v190_v62 = vadd.f32 %v189_v61, %v171_v60 }
 0x284   :  { %v191_v63 = vrot.slane %v190_v62, 2 }
 0x286   :  { %v192_v0 = vadd.f32 %v191_v63, %v190_v62 }
 0x288   :  { %v193_v1 = vrot.slane %v192_v0, 1 }
 0x28a   :  { %v194_v4 = vadd.f32 %v193_v1, %v192_v0 }
 0x28c   :  { %v198_v7 = vmul.f32 %v304_v5, %v194_v4 }
 0x28e   :  { %v199_v8 = vadd.f32 %v198_v7, %v188_v6 }
 0x290   :  { %201 = vst.msk [vmem:[#allocation5] sm:$0x1] %vm69_vm4, %v199_v8 }
 0x297   :  { %v229_v9 = vld [vmem:[#allocation5] sm:$0x1] }
 0x298   :  { %305 = vlog2.f32 %v229_v9 }
 0x299   :  { %307 = vpow2.f32 %v168_v15 }
 0x29a   :  { %309 = vpow2.f32 %v175_v16 }
 0x2a2   :  { %v306_v10 = vpop.eup %305 }
 0x2a3   :  { %v231_v11 = vmul.f32 0.6931472, %v306_v10  ;;  %v308_v17 = vpop.eup %307 }
 0x2a4   :  { %v310_v19 = vpop.eup %309  ;;  %v170_v21 = vmul.f32 %v308_v17, %v166_v18 }
 0x2a5   :  { %v232_v13 = vadd.f32 %v231_v11, %v228_v12 }
 0x2a7   :  { %v233_v14 = vsel %vm69_vm4, %v232_v13, 0.0 }
 0x2a8   :  { %234 = vadd.xlane.f32.xlu0 %v233_v14 }
 0x30d   :  { %v173_v20 = vpop.xlane.xlu0 %172 }
 0x30e   :  { %v177_v22 = vmul.f32 %v310_v19, %v173_v20 }
 0x310   :  { %v178_v23 = vadd.f32 %v177_v22, %v170_v21 }
 0x312   :  { %180 = vst.msk [vmem:[#allocation3] sm:$0xff] %vm78_vm5, %v178_v23 }
 0x319   :  { %v208_v24 = vld [vmem:[#allocation3] sm:$0xff] }
 0x31a   :  { %311 = vlog2.f32 %v208_v24 }
 0x324   :  { %v312_v25 = vpop.eup %311 }
 0x325   :  { %v210_v26 = vmul.f32 0.6931472, %v312_v25 }
 0x327   :  { %v211_v28 = vadd.f32 %v210_v26, %v207_v27 }
 0x329   :  { %v212_v29 = vsel %vm78_vm5, %v211_v28, 0.0 }
 0x32a   :  { %213 = vadd.xlane.f32.xlu1 %v212_v29 }
 0x335   :  { %v235_v30 = vpop.xlane.xlu0 %234 }
 0x336   :  { %v236_v31 = vrot.slane %v235_v30, 4 }
 0x338   :  { %v237_v32 = vadd.f32 %v236_v31, %v235_v30 }
 0x33a   :  { %v238_v33 = vrot.slane %v237_v32, 2 }
 0x33c   :  { %v239_v37 = vadd.f32 %v238_v33, %v237_v32 }
 0x33e   :  { %v240_v40 = vrot.slane %v239_v37, 1 }
 0x340   :  { %v241_v43 = vadd.f32 %v240_v40, %v239_v37 }
 0x3b7   :  { %v214_v34 = vpop.xlane.xlu1 %213 }
 0x3b8   :  { %v215_v35 = vrot.slane %v214_v34, 4 }
 0x3ba   :  { %v216_v36 = vadd.f32 %v215_v35, %v214_v34 }
 0x3bc   :  { %v217_v38 = vrot.slane %v216_v36, 2 }
 0x3be   :  { %v218_v39 = vadd.f32 %v217_v38, %v216_v36 }
 0x3c0   :  { %v219_v41 = vrot.slane %v218_v39, 1 }
 0x3c2   :  { %v220_v42 = vadd.f32 %v219_v41, %v218_v39 }
 0x3c4   :  { %283 = vpush %v220_v42 }
 0x3c5   :  { %285 = vpush %v241_v43 }
 0x3f5   :  { %s284_s11 = spop %283 }
 0x3f6   :  { %v222_v45 = vstv %s284_s11  ;;  %s286_s12 = spop %285 }
 0x3f7   :  { %v223_v46 = vadd.f32 %v222_v45, %v206_v44  ;;  %v244_v48 = vstv %s286_s12 }
 0x3f9   :  { %225 = vst.msk [vmem:[#allocation6] sm:$0x1] %vm72_vm2, %v223_v46 }
 0x400   :  { %v243_v47 = vld [vmem:[#allocation6] sm:$0x1] }
 0x401   :  { %v245_v49 = vadd.f32 %v244_v48, %v243_v47 }
 0x403   :  { %v246_v50 = vmul.f32 0.5, %v245_v49 }
 0x405   :  { %v248_v52 = vsub.f32 %v246_v50, %v247_v51 }
 0x407   :  { %v249_v53 = vmul.f32 0.125, %v248_v52 }
 0x409   :  { %251 = vst.msk [vmem:[#allocation14] sm:$0x1] %vm72_vm2, %v249_v53 }
 0x40a   :  { %368 = shalt.err (!%p365_p6)
}
 0x40b   :  { %s369_s19 = scalar_lea.hbm %s475_s3, 16 }
 0x40c   :  { %p370_p7 = scmp.ne.s32.totalorder %s475_s3, %s369_s19  ;;  %p373_p8 = scmp.lt.u32.totalorder %s369_s19, %s475_s3 }
 0x40e   :  { %p375_p9 = pnand %p373_p8, %p370_p7 }
 0x410   :  { %378 = shalt.err (!%p375_p9)
}
 0x411   :  { %261 = dma.vmem_to_hbm [thread:$0]  %s259_s14, 16, %s475_s3, [#allocation11]  }
 0x412   :  { %383 = dma.done.wait [#allocation11], 16  }
 0x413   :  { %384 = vsyncadd [#allocation11], 4294967280 }
 0x414   :  { %265 = vsyncpa [#allocation10], 1 }
 0x415   :  { %266 = vsyncpa [#allocation13], 1 }
 0x416   :  { %267 = vsyncpa [#allocation11], 1 }

</bundles_post_ra>
